<compile_context>
chip_gen: v7x
topology: tpu7x:2x2x1
jax: 0.10.0
libtpu: 0.0.40
codegen_flags: <defaults>
</compile_context>

<pallas_src>
import jax
import jax.numpy as jnp
from jax.experimental import pallas as pl
from jax.experimental.pallas import tpu as pltpu


def _conv1x1_bn_relu_kernel(x_ref, w_ref, b_ref, o_ref):
    # x_ref : (1, Cin, T)   pixels for one batch element / spatial tile,
    #                       spatial (H*W) on the lane axis
    # w_ref : (Cout, Cin)   1x1 conv weight with BN scale pre-folded
    # b_ref : (Cout, 1)     folded BN bias
    # o_ref : (1, Cout, T)
    y = jnp.dot(w_ref[...], x_ref[0],
                preferred_element_type=jnp.float32)        # (Cout, T) on MXU
    o_ref[0] = jnp.maximum(y + b_ref[...], 0.0).astype(o_ref.dtype)


def _pick_tile_hw(hw, cin, cout):
    """Largest lane-dense (multiple-of-128) tile that divides HW, fits a
    ~24 MiB double-buffered VMEM budget, and leaves >=2 tiles when possible."""
    if hw % 128 != 0:
        return hw                        # full extent (block == array dim)
    budget = 24 << 20                    # headroom under v7x's 64 MiB VMEM
    ok = [t for t in range(min(hw, 2048), 0, -128)
          if hw % t == 0 and 2 * 4 * t * (cin + cout) <= budget]
    if not ok:
        return 128
    for t in ok:                         # prefer >=2 tiles for pipelining
        if hw // t >= 2:
            return t
    return ok[0]


def conv1x1_bn_relu(x_nchw, w, scale, bias):
    """Conv2d(Cin, Cout, 1, stride=1, bias=False) -> BatchNorm2d(eval) -> ReLU.

    x_nchw : (N, Cin, H, W) float32
    w      : (Cout, Cin)    conv weight (torch weight[:, :, 0, 0])
    scale  : (Cout,)        gamma / sqrt(running_var + eps)
    bias   : (Cout,)        beta - running_mean * scale
    Returns (N, Cout, H, W) float32.
    """
    N, Cin, H, W = x_nchw.shape
    Cout = w.shape[0]
    HW = H * W

    # Free reshape: NCHW row-major -> (N, Cin, H*W); spatial goes on lanes.
    x3 = x_nchw.reshape(N, Cin, HW)

    # Fold BN scale into the weight; keep only the bias add in-kernel.
    w_folded = (w * scale[:, None]).astype(jnp.float32)
    b2 = bias.reshape(Cout, 1).astype(jnp.float32)

    tile = _pick_tile_hw(HW, Cin, Cout)
    grid = (N, HW // tile)

    out3 = pl.pallas_call(
        _conv1x1_bn_relu_kernel,
        out_shape=jax.ShapeDtypeStruct((N, Cout, HW), x3.dtype),
        grid_spec=pltpu.PrefetchScalarGridSpec(
            num_scalar_prefetch=0,
            grid=grid,
            in_specs=[
                pl.BlockSpec((1, Cin, tile), lambda n, t: (n, 0, t)),
                pl.BlockSpec((Cout, Cin), lambda n, t: (0, 0)),
                pl.BlockSpec((Cout, 1), lambda n, t: (0, 0)),
            ],
            out_specs=pl.BlockSpec((1, Cout, tile), lambda n, t: (n, 0, t)),
        ),
        compiler_params=pltpu.CompilerParams(
            dimension_semantics=("parallel", "parallel"),
            vmem_limit_bytes=48 * 1024 * 1024,
        ),
    )(x3, w_folded, b2)

    return out3.reshape(N, Cout, H, W)   # free reshape back to NCHW


def _reference(x_nchw, w, scale, bias):
    """Pure-JAX reference with the same eval-mode folded-BN semantics."""
    y = jnp.einsum("nchw,oc->nohw", x_nchw, w)
    y = y * scale[None, :, None, None] + bias[None, :, None, None]
    return jnp.maximum(y, 0.0)


if __name__ == "__main__":
    # Small deterministic setup: N=2, Cin=4, Cout=8, H=W=16, stride=1, groups=1.
    N, Cin, Cout, H, W = 2, 4, 8, 16, 16
    key = jax.random.PRNGKey(0)
    kx, kw, kg, kb, km, kv = jax.random.split(key, 6)

    x = jax.random.normal(kx, (N, Cin, H, W), jnp.float32)

    # conv.weight: (Cout, Cin, 1, 1) in torch -> kernel uses (Cout, Cin).
    w_torch = jax.random.normal(kw, (Cout, Cin, 1, 1), jnp.float32) * 0.1
    w = w_torch[:, :, 0, 0]

    # BatchNorm2d params (eval mode, running stats), deterministic.
    gamma = 1.0 + 0.1 * jax.random.normal(kg, (Cout,), jnp.float32)
    beta = 0.1 * jax.random.normal(kb, (Cout,), jnp.float32)
    running_mean = 0.1 * jax.random.normal(km, (Cout,), jnp.float32)
    running_var = 1.0 + 0.1 * jax.random.uniform(kv, (Cout,), jnp.float32)
    eps = 1e-5
    scale = gamma / jnp.sqrt(running_var + eps)
    bias = beta - running_mean * scale

    out = conv1x1_bn_relu(x, w, scale, bias)
    jax.block_until_ready(out)

    ref = _reference(x, w, scale, bias)
    assert out.shape == (N, Cout, H, W)
    assert jnp.allclose(out, ref, atol=1e-5, rtol=1e-5), "mismatch vs reference"

    print("KERNEL_OK")
</pallas_src>

<mosaic_0001>
module attributes {stable_mosaic.version = 11 : i64} {
  func.func @_conv1x1_bn_relu_kernel(%arg0: i32, %arg1: i32, %arg2: memref<1x4x128xf32, #tpu.memory_space<vmem>>, %arg3: memref<8x4xf32, #tpu.memory_space<vmem>>, %arg4: memref<8x1xf32, #tpu.memory_space<vmem>>, %arg5: memref<1x8x128xf32, #tpu.memory_space<vmem>>) attributes {dimension_semantics = [#tpu.dimension_semantics<parallel>, #tpu.dimension_semantics<parallel>], iteration_bounds = array<i64: 2, 2>, scalar_prefetch = 0 : i64, scratch_operands = 0 : i64, tpu.core_type = #tpu.core_type<tc>, window_params = [{transform_indices = @transform_0, window_bounds = array<i64: 1, 4, 128>}, {pipeline_mode = #tpu.pipeline_mode<synchronous>, transform_indices = @transform_1, window_bounds = array<i64: 8, 4>}, {pipeline_mode = #tpu.pipeline_mode<synchronous>, transform_indices = @transform_2, window_bounds = array<i64: 8, 1>}, {transform_indices = @transform_3, window_bounds = array<i64: 1, 8, 128>}]} {
    %c0 = arith.constant 0 : index
    %c0_0 = arith.constant 0 : index
    %0 = vector.load %arg3[%c0, %c0_0] : memref<8x4xf32, #tpu.memory_space<vmem>>, vector<8x4xf32>
    %c0_1 = arith.constant 0 : index
    %c0_2 = arith.constant 0 : index
    %c0_3 = arith.constant 0 : index
    %1 = vector.load %arg2[%c0_1, %c0_2, %c0_3] : memref<1x4x128xf32, #tpu.memory_space<vmem>>, vector<1x4x128xf32>
    %2 = vector.shape_cast %1 : vector<1x4x128xf32> to vector<4x128xf32>
    %cst = arith.constant dense<0.000000e+00> : vector<8x128xf32>
    %3 = tpu.matmul %0, %2, %cst {dimension_numbers = #tpu.dot_dimension_numbers<[1], [0], [0], [1], [0, 0, 1, 1], [], []>} : vector<8x4xf32>, vector<4x128xf32>, vector<8x128xf32> -> vector<8x128xf32>
    %c0_4 = arith.constant 0 : index
    %c0_5 = arith.constant 0 : index
    %4 = vector.load %arg4[%c0_4, %c0_5] : memref<8x1xf32, #tpu.memory_space<vmem>>, vector<8x1xf32>
    %5 = vector.broadcast %4 : vector<8x1xf32> to vector<8x128xf32>
    %6 = arith.addf %3, %5 : vector<8x128xf32>
    %cst_6 = arith.constant 0.000000e+00 : f32
    %7 = vector.broadcast %cst_6 : f32 to vector<8x128xf32>
    %8 = arith.maximumf %6, %7 : vector<8x128xf32>
    %c0_7 = arith.constant 0 : index
    %c0_8 = arith.constant 0 : index
    %c0_9 = arith.constant 0 : index
    %9 = vector.load %arg5[%c0_7, %c0_8, %c0_9] : memref<1x8x128xf32, #tpu.memory_space<vmem>>, vector<1x8x128xf32>
    %10 = vector.shape_cast %9 : vector<1x8x128xf32> to vector<8x128xf32>
    %11 = vector.shape_cast %8 : vector<8x128xf32> to vector<1x8x128xf32>
    tpu.vector_store %arg5[%c0_7, %c0_8, %c0_9], %11 {strides = array<i32>} : memref<1x8x128xf32, #tpu.memory_space<vmem>>, vector<1x8x128xf32>,
    return
  }
  func.func @transform_0(%arg0: i32, %arg1: i32) -> (i32, i32, i32) {
    %c0_i32 = arith.constant 0 : i32
    %c0_i32_0 = arith.constant 0 : i32
    return %arg0, %c0_i32, %arg1 : i32, i32, i32
  }
  func.func @transform_1(%arg0: i32, %arg1: i32) -> (i32, i32) {
    %c0_i32 = arith.constant 0 : i32
    %c0_i32_0 = arith.constant 0 : i32
    %c0_i32_1 = arith.constant 0 : i32
    return %c0_i32, %c0_i32_0 : i32, i32
  }
  func.func @transform_2(%arg0: i32, %arg1: i32) -> (i32, i32) {
    %c0_i32 = arith.constant 0 : i32
    %c0_i32_0 = arith.constant 0 : i32
    %c0_i32_1 = arith.constant 0 : i32
    return %c0_i32, %c0_i32_0 : i32, i32
  }
  func.func @transform_3(%arg0: i32, %arg1: i32) -> (i32, i32, i32) {
    %c0_i32 = arith.constant 0 : i32
    %c0_i32_0 = arith.constant 0 : i32
    return %arg0, %c0_i32, %arg1 : i32, i32, i32
  }
}

</mosaic_0001>

<bundles_post_ra>
// kernel: tpu_custom_call.1
= control target key start
LH: loop header
LB: loop body
LE: loop exit
PB: predicated region body
PF: predicated region fallthrough
CT: control target
= control target key end

     0   :  { %8 = vsyncpa [#allocation3], 0  ;;  %s736_s0 = inlined_call_operand.vmem [shape: f32[2,4,256], index: 0, kind: input, shape index: {}]   ;;  %s737_s1 = inlined_call_operand.vmem [shape: f32[8,4], index: 1, kind: input, shape index: {}]   ;;  %s738_s2 = inlined_call_operand.vmem [shape: f32[8,1], index: 2, kind: input, shape index: {}]   ;;  %s739_s3 = inlined_call_operand.hbm [shape: f32[2,8,256], index: 3, kind: output, shape index: {}]  }
   0x1   :  { %10 = vsyncpa [#allocation3 + $0x1], 0  ;;  %s593_s12 = smov 0   ;;  %s595_s13 = smov 0  }
   0x2   :  { %s597_s14 = smov 0   ;;  %s599_s15 = smov 0  }
   0x3   :  { %s601_s16 = smov 0   ;;  %s603_s17 = smov 0  }
   0x4   :  { %s605_s18 = smov 0   ;;  %s607_s19 = smov 0  }
   0x5 LB: > { %s376_s20 = sadd.s32 4294967295, %s567_s19   ;;  %s377_s21 = sadd.s32 4294967294, %s567_s19   ;;  %s567_s19 = sphi %s607_s19, %s16_s19   ;;  %s563_s18 = sphi %s605_s18, %s748_s18   ;;  %s559_s17 = sphi %s603_s17, %s747_s17   ;;  %s555_s16 = sphi %s601_s16, %s746_s16   ;;  %s551_s15 = sphi %s599_s15, %s745_s15   ;;  %s547_s14 = sphi %s597_s14, %s744_s14   ;;  %s543_s13 = sphi %s595_s13, %s743_s13   ;;  %s539_s12 = sphi %s593_s12, %s742_s12  }
   0x6   : > { %s25_s22 = sadd.s32 1, %s559_s17  ;;  %s28_s23 = sadd.s32 1, %s563_s18 }
   0x7   : > { %p26_p0 = scmp.ge.s32.totalorder %s25_s22, 2  ;;  %p117_p1 = scmp.ne.s32.totalorder %s547_s14, %s543_s13 }
   0x8   : > { %p118_p2 = scmp.eq.s32.totalorder %s376_s20, 3  ;;  %p123_p5 = scmp.ne.s32.totalorder %s543_s13, %s539_s12 }
   0x9   : > { %s750_s22 = smov (%p26_p0, %s25_s22), 0  ;;  %s752_s23 = smov (!%p26_p0, %s28_s23), %s563_s18 }
   0xa   : > { %s103_s24 = ssub.s32 %s559_s17, %s750_s22  ;;  %p644_p3 = por %p118_p2, %p117_p1 }
   0xb   : > { %p30_p4 = scmp.ge.s32.totalorder %s752_s23, 2  ;;  %p124_p6 = scmp.eq.s32.totalorder %s377_s21, 3 }
   0xc   : > { %p380_p7 = scmp.ge.s32.totalorder %s567_s19, 1  ;;  %p159_p9 = scmp.lt.s32.totalorder %s567_s19, 5 }
   0xd   : > { %s754_s23 = smov (%p30_p4, %s752_s23), 0  ;;  %p653_p8 = por %p124_p6, %p123_p5 }
   0xe   : > { %s102_s27 = ssub.s32 %s563_s18, %s754_s23  ;;  %s107_s28 = sadd.s32 1, %s547_s14 }
   0xf   : > { %s104_s29 = sor.u32 %s103_s24, %s102_s27  ;;  %p160_p10 = pnand %p380_p7, %p159_p9 }
  0x10   : > { %p105_p11 = scmp.eq.s32.totalorder %s104_s29, 0  ;;  %p186_p12 = scmp.lt.s32.totalorder (!%p160_p10), %s555_s16, 1  ;;  %v569_v0 = vmov (!%p160_p10), 0.0   ;;  %vm570_vm0 = vmmov (!%p160_p10), 0   ;;  %v196_v1 = vld [vmem:[%s738_s2] sm:$0xff] (!%p160_p10)  ;;  %v571_v2 = vmov (!%p160_p10), 0  }
  0x11   : > { %163 = sbr.rel (%p160_p10) target bundleno = 262 (0x106), region = 32  ;;  %p188_p13 = scmp.lt.s32.totalorder (!%p160_p10), %s551_s15, 1  ;;  %393 = vmatprep.subr.mxu0 (!%p160_p10), %v569_v0  ;;  %395 = vmatprep.mubr.msk.f32.mxu0 (!%p160_p10), %vm570_vm0, %v569_v0  ;;  %vm206_vm1 = vcmask (!%p160_p10), 1043456   ;;  %v194_v3 = vld [vmem:[%s737_s1] sm:$0xff] (!%p160_p10)  ;;  %vm202_vm2 = vcmask (!%p160_p10), 31744  }
  0x12   : > { %s662_s30 = scalar_select %p105_p11, %s547_s14, %s107_s28  }
  0x13   : > { %472 = vset.pattern.permute.xlu0 (!%p160_p10), %v571_v2  ;;  %s183_s28 = sand.u32 (!%p160_p10), 1, %s543_s13   ;;  %s387_s4 = sshll.u32 (!%p160_p10), %s555_s16, 1 }
  0x14   : > { %199 = vperm.xlu0 (!%p160_p10), %472, %v196_v1   ;;  %s381_s29 = sshll.u32 (!%p160_p10), %s183_s28, 3  ;;  %s294_s5 = sadd.s32 (!%p160_p10), %s551_s15, %s387_s4 }
  0x15   : > { %s572_s20 = smov (!%p160_p10), [#allocation2]  }
  0x18   : > { %s187_s6 = scalar_select %p186_p12, %s555_s16, 1 }
  0x19   : > { %s189_s7 = scalar_select %p188_p13, %s551_s15, 1 }
  0x1a   : > { %s382_s8 = sshll.u32 %s187_s6, 1  ;;  %s388_s6 = sshll.u32 %s294_s5, 7 }
  0x1b   : > { %s191_s9 = sadd.s32 %s382_s8, %s189_s7  ;;  %s185_s7 = scalar_lea.vmem [#allocation2], %s381_s29 }
  0x1c   : > { %s383_s10 = sshll.u32 %s191_s9, 2  ;;  %s298_s8 = sshll.u32 %s185_s7, 4  ;;  %s685_s8 = int_to_ptr.vmem [resolvable:$true] %s298_s8 }
  0x1d   : > { %s193_s21 = scalar_lea.vmem %s736_s0, %s383_s10  ;;  %s683_s11 = scalar_lea.hbm %s739_s3, %s388_s6 }
  0x1e   : > { %v195_v4 = vld [vmem:[%s193_s21] sm:$0xf]  ;;  %s283_s15 = scalar_lea.sflag [#allocation3], %s183_s28  ;;  %s473_s16 = scalar_lea.vmem %s685_s8, 128 }
  0x1f   : > { %394 = vmatpush3.msk.msra.mxu0 %vm206_vm1, %v195_v4  ;;  %p474_p0 = scmp.ne.s32.totalorder %s685_s8, %s473_s16  ;;  %s477_s21 = sshll.u32 %s572_s20, 4  ;;  %s478_s21 = int_to_ptr.vmem [resolvable:$false] %s477_s21 }
  0x20   : > { %396 = vmatmul.mubr.msk.f32.vlgmr.msra.gmra.mrb[0].mxu0 %vm202_vm2, %v194_v3  ;;  %s479_s24 = scalar_lea.vmem %s478_s21, 256  ;;  %p480_p4 = scmp.lt.s32.totalorder %s685_s8, %s478_s21 }
  0x21   : > { %p475_p1 = pnand %p474_p0, %p644_p3  ;;  %p481_p5 = scmp.lt.s32.totalorder %s479_s24, %s473_s16 }
  0x23   : > { %p476_p2 = pneg %p475_p1  ;;  %p482_p6 = por %p481_p5, %p480_p4 }
  0x25   : > { %p483_p7 = pnand %p482_p6, %p476_p2 }
  0x93   : > { %v200_v5 = vpop.permute.xlu0 %199 }
  0xf3   : > { %v276_v6 = vpop.f32.mrb[0].mxu0 }
  0xf4   : > { %v277_v7 = vadd.f32 %v276_v6, %v200_v5  ;;  %v397_v8 = vpop.f32.mrb[1].mxu0 }
  0xf6   : > { %v280_v9 = vmax.f32 %v277_v7, 0.0 }
  0xf8   : > { %281 = vst [vmem:[%s185_s7] sm:$0xff] %v280_v9 }
  0xf9   : > { %486 = shalt.err (!%p483_p7)
}
  0xfa   : > { %s487_s27 = scalar_lea.hbm %s683_s11, 128  ;;  %s491_s4 = scalar_lea.hbm %s739_s3, 512 }
  0xfb   : > { %p488_p9 = scmp.ne.s32.totalorder %s683_s11, %s487_s27  ;;  %p492_p12 = scmp.lt.u32.totalorder %s683_s11, %s739_s3 }
  0xfc   : > { %p493_p13 = scmp.lt.u32.totalorder %s491_s4, %s487_s27  ;;  %p495_p1 = scmp.lt.u32.totalorder %s487_s27, %s683_s11 }
  0xfd   : > { %p489_p10 = pnand %p488_p9, %p644_p3 }
  0xfe   : > { %p494_p0 = por %p493_p13, %p492_p12 }
  0xff   : > { %p490_p11 = pneg %p489_p10 }
 0x100   : > { %p496_p2 = por %p495_p1, %p494_p0 }
 0x102   : > { %p497_p4 = pnand %p496_p2, %p490_p11 }
 0x104   : > { %500 = shalt.err (!%p497_p4)
}
 0x105   : > { %398 = dma.vmem_to_hbm [thread:$0]  (%p644_p3), %s685_s8, 128, %s683_s11, %s283_s15  }
 0x106 PF: > { %p404_p5 = scmp.ge.s32.totalorder %s567_s19, 2  ;;  %s310_s7 = sand.u32 1, %s539_s12  }
 0x107   : > { %s311_s9 = scalar_lea.sflag [#allocation3], %s310_s7 }
 0x108   : > { %p401_p6 = pnand %p404_p5, %p653_p8 }
 0x10a   : > { %534 = dma.done.wait (!%p401_p6), %s311_s9, 128  }
 0x10b   : > { %536 = vsyncadd (!%p401_p6), %s311_s9, 4294967168  ;;  %s16_s19 = sadd.s32 1, %s567_s19   ;;  %s742_s12 = smov %s543_s13 }
 0x10c   : > { %p13_p7 = scmp.ge.s32.totalorder %s16_s19, 6   ;;  %s743_s13 = smov %s547_s14 }
 0x10d   : > { %s744_s14 = smov %s662_s30  ;;  %s745_s15 = smov %s559_s17 }
 0x10e   : > { %s746_s16 = smov %s563_s18  ;;  %s747_s17 = smov %s750_s22 }
 0x10f   : > { %s748_s18 = smov %s754_s23  ;;  %15 = sbr.rel (!%p13_p7) target bundleno = 5 (0x5), region = 67 }
 0x116   :  { %316 = vsyncpa [#allocation3], 1 }
 0x117   :  { %318 = vsyncpa [#allocation3 + $0x1], 1 }

</bundles_post_ra>
